<compile_context>
chip_gen: v6e
topology: v6e:2x2x1
jax: 0.10.0
libtpu: 0.0.40
codegen_flags: <defaults>
</compile_context>

<pallas_src>
import jax
import jax.numpy as jnp
from jax.experimental import pallas as pl
from jax.experimental.pallas import tpu as pltpu


def _psblock_conv_kernel(x_main_ref, x_tail_ref, w_ref, b_ref, o_ref):
    # x_main_ref: (1, TH,  Wp, Cin)  padded input rows [r*TH, r*TH + TH)
    # x_tail_ref: (1, 2,   Wp, Cin)  padded input rows [r*TH + TH, r*TH + TH + 2)  (halo)
    # w_ref:      (9*Cin, Cout)      conv weights, rows ordered (kh, kw, ci)
    # b_ref:      (1, Cout)          bias
    # o_ref:      (1, TH, W, Cout)   conv + bias + LeakyReLU(0.2), channels-last
    TH = x_main_ref.shape[1]
    Cin = x_main_ref.shape[3]
    W = o_ref.shape[2]
    Cout = o_ref.shape[3]

    # Assemble the (TH+2)-row halo'd window for this tile.
    win = jnp.concatenate([x_main_ref[0], x_tail_ref[0]], axis=0)   # (TH+2, Wp, Cin)

    # im2col: one column group of width Cin per 3x3 tap -> (TH*W, 9*Cin).
    cols = []
    for kh in range(3):
        for kw in range(3):
            cols.append(win[kh:kh + TH, kw:kw + W, :].reshape(TH * W, Cin))
    patch = jnp.concatenate(cols, axis=1)                           # (TH*W, 9*Cin)

    # Single MXU matmul with K = 9*Cin, f32 accumulation.
    acc = jnp.dot(patch, w_ref[...], preferred_element_type=jnp.float32)  # (TH*W, Cout)
    acc = acc + b_ref[...]                                          # bias (1, Cout) broadcast
    out = jnp.where(acc >= 0.0, acc, 0.2 * acc)                     # LeakyReLU(0.2)
    o_ref[...] = out.reshape(1, TH, W, Cout).astype(o_ref.dtype)


def _pick_tile_rows(h):
    """Largest row tile <= 16 that divides H, preferring >= 2 tiles for pipelining."""
    for th in (16, 8, 4, 2):
        if h % th == 0 and h // th >= 2:
            return th
    return h


def _vmem_limit_bytes(th, wp, w, cin, cout):
    f32 = 4
    main_blk = th * wp * cin
    tail_blk = 2 * wp * cin
    out_blk = th * w * cout
    weights = 9 * cin * cout + cout
    patch = th * w * 9 * cin
    # Double-buffered pipeline blocks + single-buffered live values (im2col patch, acc).
    est = f32 * (2 * (main_blk + tail_blk + out_blk + weights) + patch + out_blk)
    return int(min(max(2 * est, 16 * 1024 * 1024), 48 * 1024 * 1024))


@jax.jit
def psblock_forward(x_nchw, w_oihw, bias):
    """PSBlock forward. x_nchw: (N, Cin, H, W) f32 -> (N, Cin, 2H, 2W) f32."""
    N, Cin, H, W = x_nchw.shape
    Cout = w_oihw.shape[0]          # = 4 * n_feat
    n_feat = Cout // 4
    assert H % 2 == 0, "PSBlock Pallas kernel requires an even input height"

    TH = _pick_tile_rows(H)         # rows per grid step (divides H)
    R = H // TH
    Wp = W + 2
    half_th = TH // 2               # TH is always even here

    # Layout prep: NCHW -> NHWC + 1-pixel zero pad (one fused XLA pass over the input).
    x_pad = jnp.pad(jnp.transpose(x_nchw, (0, 2, 3, 1)),
                    ((0, 0), (1, 1), (1, 1), (0, 0)))               # (N, H+2, W+2, Cin)

    # OIHW -> (kh, kw, ci) x Cout weight matrix for the single im2col matmul (trace-time).
    w_mat = jnp.transpose(w_oihw, (2, 3, 1, 0)).reshape(9 * Cin, Cout)
    b2d = bias.reshape(1, Cout)

    conv_out = pl.pallas_call(
        _psblock_conv_kernel,
        out_shape=jax.ShapeDtypeStruct((N, H, W, Cout), jnp.float32),
        grid_spec=pltpu.PrefetchScalarGridSpec(
            num_scalar_prefetch=0,
            grid=(N, R),
            in_specs=[
                # TH padded rows starting at r*TH ...
                pl.BlockSpec((1, TH, Wp, Cin), lambda b, r: (b, r, 0, 0)),
                # ... plus the 2-row halo starting at r*TH + TH (same array, 2-row blocks).
                pl.BlockSpec((1, 2, Wp, Cin),
                             lambda b, r: (b, (r + 1) * half_th, 0, 0)),
                pl.BlockSpec((9 * Cin, Cout), lambda b, r: (0, 0)),
                pl.BlockSpec((1, Cout), lambda b, r: (0, 0)),
            ],
            out_specs=pl.BlockSpec((1, TH, W, Cout), lambda b, r: (b, r, 0, 0)),
        ),
        compiler_params=pltpu.CompilerParams(
            dimension_semantics=("parallel", "parallel"),
            vmem_limit_bytes=_vmem_limit_bytes(TH, Wp, W, Cin, Cout)),
    )(x_pad, x_pad, w_mat, b2d)

    # PixelShuffle(2) + NHWC->NCHW as ONE fused XLA permutation:
    #   out[n, c, 2i+di, 2j+dj] = conv[n, i, j, c*4 + di*2 + dj]
    ps = conv_out.reshape(N, H, W, n_feat, 2, 2)
    ps = jnp.transpose(ps, (0, 3, 1, 4, 2, 5))
    return ps.reshape(N, n_feat, 2 * H, 2 * W)


def _reference(x_nchw, w_oihw, bias):
    """Pure-JAX reference matching the PyTorch module."""
    conv = jax.lax.conv_general_dilated(
        x_nchw, w_oihw, window_strides=(1, 1), padding="SAME",
        dimension_numbers=("NCHW", "OIHW", "NCHW"))
    conv = conv + bias[None, :, None, None]
    N, C4, H, W = conv.shape
    nf = C4 // 4
    ps = conv.reshape(N, nf, 2, 2, H, W)
    ps = jnp.transpose(ps, (0, 1, 4, 2, 5, 3)).reshape(N, nf, 2 * H, 2 * W)
    return jnp.where(ps >= 0.0, ps, 0.2 * ps)


if __name__ == "__main__":
    key = jax.random.PRNGKey(0)
    n_feat = 4
    N, H, W = 2, 16, 16

    k_x, k_w, k_b = jax.random.split(key, 3)
    x = jax.random.normal(k_x, (N, n_feat, H, W), dtype=jnp.float32)
    # Conv2d(n_feat, 4*n_feat, 3) weight: (Cout, Cin, 3, 3), bias: (Cout,)
    w = jax.random.normal(k_w, (4 * n_feat, n_feat, 3, 3), dtype=jnp.float32) * 0.1
    b = jax.random.normal(k_b, (4 * n_feat,), dtype=jnp.float32) * 0.1

    out = jax.block_until_ready(psblock_forward(x, w, b))

    ref = _reference(x, w, b)
    assert out.shape == (N, n_feat, 2 * H, 2 * W), out.shape
    assert jnp.allclose(out, ref, atol=1e-4, rtol=1e-4), "mismatch vs reference"

    print("KERNEL_OK")
</pallas_src>

<mosaic_0001>
module attributes {stable_mosaic.version = 11 : i64} {
  func.func @_psblock_conv_kernel(%arg0: i32, %arg1: i32, %arg2: memref<1x8x18x4xf32, #tpu.memory_space<vmem>>, %arg3: memref<1x2x18x4xf32, #tpu.memory_space<vmem>>, %arg4: memref<36x16xf32, #tpu.memory_space<vmem>>, %arg5: memref<1x16xf32, #tpu.memory_space<vmem>>, %arg6: memref<1x8x16x16xf32, #tpu.memory_space<vmem>>) attributes {dimension_semantics = [#tpu.dimension_semantics<parallel>, #tpu.dimension_semantics<parallel>], iteration_bounds = array<i64: 2, 2>, scalar_prefetch = 0 : i64, scratch_operands = 0 : i64, tpu.core_type = #tpu.core_type<tc>, window_params = [{transform_indices = @transform_0, window_bounds = array<i64: 1, 8, 18, 4>}, {transform_indices = @transform_1, window_bounds = array<i64: 1, 2, 18, 4>}, {pipeline_mode = #tpu.pipeline_mode<synchronous>, transform_indices = @transform_2, window_bounds = array<i64: 36, 16>}, {pipeline_mode = #tpu.pipeline_mode<synchronous>, transform_indices = @transform_3, window_bounds = array<i64: 1, 16>}, {transform_indices = @transform_4, window_bounds = array<i64: 1, 8, 16, 16>}]} {
    %c0 = arith.constant 0 : index
    %c0_0 = arith.constant 0 : index
    %c0_1 = arith.constant 0 : index
    %c0_2 = arith.constant 0 : index
    %0 = vector.load %arg2[%c0, %c0_0, %c0_1, %c0_2] : memref<1x8x18x4xf32, #tpu.memory_space<vmem>>, vector<1x8x18x4xf32>
    %1 = vector.shape_cast %0 : vector<1x8x18x4xf32> to vector<8x18x4xf32>
    %c0_3 = arith.constant 0 : index
    %c0_4 = arith.constant 0 : index
    %c0_5 = arith.constant 0 : index
    %c0_6 = arith.constant 0 : index
    %2 = vector.load %arg3[%c0_3, %c0_4, %c0_5, %c0_6] : memref<1x2x18x4xf32, #tpu.memory_space<vmem>>, vector<1x2x18x4xf32>
    %3 = vector.shape_cast %2 : vector<1x2x18x4xf32> to vector<2x18x4xf32>
    %4 = tpu.concatenate %1, %3 in 0 : vector<8x18x4xf32>, vector<2x18x4xf32> -> vector<10x18x4xf32>
    %5 = vector.extract_strided_slice %4 {offsets = [0, 0, 0], sizes = [8, 16, 4], strides = [1, 1, 1]} : vector<10x18x4xf32> to vector<8x16x4xf32>
    %6 = vector.shape_cast %5 : vector<8x16x4xf32> to vector<128x4xf32>
    %7 = vector.extract_strided_slice %4 {offsets = [0, 1, 0], sizes = [8, 16, 4], strides = [1, 1, 1]} : vector<10x18x4xf32> to vector<8x16x4xf32>
    %8 = vector.shape_cast %7 : vector<8x16x4xf32> to vector<128x4xf32>
    %9 = vector.extract_strided_slice %4 {offsets = [0, 2, 0], sizes = [8, 16, 4], strides = [1, 1, 1]} : vector<10x18x4xf32> to vector<8x16x4xf32>
    %10 = vector.shape_cast %9 : vector<8x16x4xf32> to vector<128x4xf32>
    %11 = vector.extract_strided_slice %4 {offsets = [1, 0, 0], sizes = [8, 16, 4], strides = [1, 1, 1]} : vector<10x18x4xf32> to vector<8x16x4xf32>
    %12 = vector.shape_cast %11 : vector<8x16x4xf32> to vector<128x4xf32>
    %13 = vector.extract_strided_slice %4 {offsets = [1, 1, 0], sizes = [8, 16, 4], strides = [1, 1, 1]} : vector<10x18x4xf32> to vector<8x16x4xf32>
    %14 = vector.shape_cast %13 : vector<8x16x4xf32> to vector<128x4xf32>
    %15 = vector.extract_strided_slice %4 {offsets = [1, 2, 0], sizes = [8, 16, 4], strides = [1, 1, 1]} : vector<10x18x4xf32> to vector<8x16x4xf32>
    %16 = vector.shape_cast %15 : vector<8x16x4xf32> to vector<128x4xf32>
    %17 = vector.extract_strided_slice %4 {offsets = [2, 0, 0], sizes = [8, 16, 4], strides = [1, 1, 1]} : vector<10x18x4xf32> to vector<8x16x4xf32>
    %18 = vector.shape_cast %17 : vector<8x16x4xf32> to vector<128x4xf32>
    %19 = vector.extract_strided_slice %4 {offsets = [2, 1, 0], sizes = [8, 16, 4], strides = [1, 1, 1]} : vector<10x18x4xf32> to vector<8x16x4xf32>
    %20 = vector.shape_cast %19 : vector<8x16x4xf32> to vector<128x4xf32>
    %21 = vector.extract_strided_slice %4 {offsets = [2, 2, 0], sizes = [8, 16, 4], strides = [1, 1, 1]} : vector<10x18x4xf32> to vector<8x16x4xf32>
    %22 = vector.shape_cast %21 : vector<8x16x4xf32> to vector<128x4xf32>
    %23 = tpu.concatenate %6, %8, %10, %12, %14, %16, %18, %20, %22 in 1 : vector<128x4xf32>, vector<128x4xf32>, vector<128x4xf32>, vector<128x4xf32>, vector<128x4xf32>, vector<128x4xf32>, vector<128x4xf32>, vector<128x4xf32>, vector<128x4xf32> -> vector<128x36xf32>
    %c0_7 = arith.constant 0 : index
    %c0_8 = arith.constant 0 : index
    %24 = vector.load %arg4[%c0_7, %c0_8] : memref<36x16xf32, #tpu.memory_space<vmem>>, vector<36x16xf32>
    %cst = arith.constant dense<0.000000e+00> : vector<128x16xf32>
    %25 = tpu.matmul %23, %24, %cst {dimension_numbers = #tpu.dot_dimension_numbers<[1], [0], [0], [1], [0, 0, 1, 1], [], []>} : vector<128x36xf32>, vector<36x16xf32>, vector<128x16xf32> -> vector<128x16xf32>
    %c0_9 = arith.constant 0 : index
    %c0_10 = arith.constant 0 : index
    %26 = vector.load %arg5[%c0_9, %c0_10] : memref<1x16xf32, #tpu.memory_space<vmem>>, vector<1x16xf32>
    %27 = vector.broadcast %26 : vector<1x16xf32> to vector<128x16xf32>
    %28 = arith.addf %25, %27 : vector<128x16xf32>
    %cst_11 = arith.constant 0.000000e+00 : f32
    %29 = vector.broadcast %cst_11 : f32 to vector<128x16xf32>
    %30 = arith.cmpf oge, %28, %29 : vector<128x16xf32>
    %cst_12 = arith.constant 2.000000e-01 : f32
    %31 = vector.broadcast %cst_12 : f32 to vector<128x16xf32>
    %32 = arith.mulf %31, %28 : vector<128x16xf32>
    %33 = arith.select %30, %28, %32 : vector<128x16xi1>, vector<128x16xf32>
    %34 = vector.shape_cast %33 : vector<128x16xf32> to vector<1x8x16x16xf32>
    %c0_13 = arith.constant 0 : index
    %c0_14 = arith.constant 0 : index
    %c0_15 = arith.constant 0 : index
    %c0_16 = arith.constant 0 : index
    %35 = vector.load %arg6[%c0_13, %c0_14, %c0_15, %c0_16] : memref<1x8x16x16xf32, #tpu.memory_space<vmem>>, vector<1x8x16x16xf32>
    tpu.vector_store %arg6[%c0_13, %c0_14, %c0_15, %c0_16], %34 {strides = array<i32>} : memref<1x8x16x16xf32, #tpu.memory_space<vmem>>, vector<1x8x16x16xf32>,
    return
  }
  func.func @transform_0(%arg0: i32, %arg1: i32) -> (i32, i32, i32, i32) {
    %c0_i32 = arith.constant 0 : i32
    %c0_i32_0 = arith.constant 0 : i32
    %c0_i32_1 = arith.constant 0 : i32
    return %arg0, %arg1, %c0_i32, %c0_i32_0 : i32, i32, i32, i32
  }
  func.func @transform_1(%arg0: i32, %arg1: i32) -> (i32, i32, i32, i32) {
    %c1_i32 = arith.constant 1 : i32
    %0 = arith.addi %arg1, %c1_i32 : i32
    %c4_i32 = arith.constant 4 : i32
    %1 = arith.muli %0, %c4_i32 : i32
    %c0_i32 = arith.constant 0 : i32
    %c0_i32_0 = arith.constant 0 : i32
    %c0_i32_1 = arith.constant 0 : i32
    return %arg0, %1, %c0_i32, %c0_i32_0 : i32, i32, i32, i32
  }
  func.func @transform_2(%arg0: i32, %arg1: i32) -> (i32, i32) {
    %c0_i32 = arith.constant 0 : i32
    %c0_i32_0 = arith.constant 0 : i32
    %c0_i32_1 = arith.constant 0 : i32
    return %c0_i32, %c0_i32_0 : i32, i32
  }
  func.func @transform_3(%arg0: i32, %arg1: i32) -> (i32, i32) {
    %c0_i32 = arith.constant 0 : i32
    %c0_i32_0 = arith.constant 0 : i32
    %c0_i32_1 = arith.constant 0 : i32
    return %c0_i32, %c0_i32_0 : i32, i32
  }
  func.func @transform_4(%arg0: i32, %arg1: i32) -> (i32, i32, i32, i32) {
    %c0_i32 = arith.constant 0 : i32
    %c0_i32_0 = arith.constant 0 : i32
    %c0_i32_1 = arith.constant 0 : i32
    return %arg0, %arg1, %c0_i32, %c0_i32_0 : i32, i32, i32, i32
  }
}

</mosaic_0001>

<bundles_post_ra>
// kernel: psblock_forward.1
= control target key start
LH: loop header
LB: loop body
LE: loop exit
PB: predicated region body
PF: predicated region fallthrough
CT: control target
= control target key end

     0   :  { %s1630_s15 = smov 0   ;;  %s1632_s16 = smov 0   ;;  %s2405_s0 = inlined_call_operand.vmem [shape: f32[2,18,18,4], index: 0, kind: input, shape index: {}, may-alias: {0,1}]   ;;  %s2406_s1 = inlined_call_operand.vmem [shape: f32[2,18,18,4], index: 1, kind: input, shape index: {}, may-alias: {0,1}]   ;;  %s2407_s2 = inlined_call_operand.vmem [shape: f32[36,16], index: 2, kind: input, shape index: {}]   ;;  %s2408_s3 = inlined_call_operand.vmem [shape: f32[1,16], index: 3, kind: input, shape index: {}]   ;;  %s2409_s4 = inlined_call_operand.vmem [shape: f32[2,16,16,16], index: 4, kind: output, shape index: {}]  }
   0x1   :  { %s1634_s17 = smov 0   ;;  %s1636_s18 = smov 0  }
   0x2   :  { %s1638_s19 = smov 0  }
   0x3 LB: > { %s23_s20 = sadd.s32 1, %s1587_s17  ;;  %s26_s21 = sadd.s32 1, %s1591_s18  ;;  %s1595_s19 = sphi %s1638_s19, %s14_s19   ;;  %s1591_s18 = sphi %s1636_s18, %s2440_s18   ;;  %s1587_s17 = sphi %s1634_s17, %s2439_s17   ;;  %s1583_s16 = sphi %s1632_s16, %s2438_s16   ;;  %s1579_s15 = sphi %s1630_s15, %s2437_s15  }
   0x4   : > { %p24_p0 = scmp.ge.s32.totalorder %s23_s20, 2  ;;  %p1402_p1 = scmp.ge.s32.totalorder %s1595_s19, 1 }
   0x5   : > { %p220_p2 = scmp.lt.s32.totalorder %s1595_s19, 5 }
   0x6   : > { %s2442_s20 = smov (%p24_p0, %s23_s20), 0  ;;  %s2444_s21 = smov (!%p24_p0, %s26_s21), %s1591_s18 }
   0x7   : > { %p221_p3 = pnand %p1402_p1, %p220_p2  ;;  %p28_p4 = scmp.ge.s32.totalorder %s2444_s21, 2 }
   0x9   : > { %s2446_s21 = smov (%p28_p4, %s2444_s21), 0  ;;  %224 = sbr.rel (%p221_p3) target bundleno = 598 (0x256), region = 36 }
   0xe   : > { %s1660_s22 = sshll.u32 %s1579_s15, 3  ;;  %p279_p5 = scmp.lt.s32.totalorder %s1583_s16, 1  ;;  %vm374_vm0 = vcmask 1046528   ;;  %vm415_vm1 = vcmask 1045504   ;;  %vm1063_vm2 = vcmask 1043456   ;;  %vm866_vm3 = vcmask 31744  }
   0xf   : > { %p281_p6 = scmp.lt.s32.totalorder %s1660_s22, 17  ;;  %s1597_s5 = smov 4   ;;  %vm883_vm4 = vcmask 64512   ;;  %vm900_vm5 = vcmask 97280   ;;  %vm917_vm6 = vcmask 130048   ;;  %vm934_vm7 = vcmask 162816  }
  0x10   : > { %s2448_s16 = smov (!%p279_p5, %s1583_s16), 1  ;;  %s1598_s6 = smov 8   ;;  %vm951_vm8 = vcmask 195584   ;;  %vm968_vm9 = vcmask 228352   ;;  %vm985_vm10 = vcmask 261120   ;;  %vm1014_vm11 = vcmask 293888  }
  0x11   : > { %s282_s23 = scalar_select %p281_p6, %s1660_s22, 17 }
  0x12   : > { %s1507_s24 = smul.u32 54, %s2448_s16  ;;  %s1599_s7 = smov 12  }
  0x13   : > { %s1506_s25 = smul.u32 3, %s282_s23  ;;  %s1600_s8 = smov 16  }
  0x14   : > { %s1601_s9 = smov 20   ;;  %s1602_s10 = smov 24  }
  0x15   : > { %s285_s26 = sadd.s32 %s1507_s24, %s1506_s25  ;;  %s1603_s11 = smov 28  }
  0x16   : > { %s1404_s27 = sshll.u32 %s285_s26, 3  ;;  %s1604_s28 = smov 32  }
  0x17   : > { %s1672_s30 = scalar_lea.vmem %s2405_s0, %s1404_s27  ;;  %p312_p8 = scmp.lt.s32.totalorder %s1660_s22, 15 }
  0x18   : > { %v1675_v0 = vld [vmem:[%s1672_s30 + $0x8] sm:$0xff]  ;;  %v322_v1 = vld [vmem:[%s1672_s30 + $0x10] sm:$0x3]  ;;  %v1679_v2 = vld [vmem:[%s1672_s30] sm:$0xff] }
  0x19   : > { %v376_v3 = vrot.slane %v1675_v0, 1  ;;  %v378_v4 = vrot.slane %v322_v1, 1  ;;  %v375_v5 = vrot.slane %v1679_v2, 1  ;;  %v1684_v6 = vld [vmem:[%s1672_s30 + $0x68] sm:$0xff]  ;;  %v334_v7 = vld [vmem:[%s1672_s30 + $0x70] sm:$0x3] }
  0x1a   : > { %v396_v8 = vrot.slane %v1684_v6, 1  ;;  %v398_v9 = vrot.slane %v334_v7, 1  ;;  %v1689_v10 = vld [vmem:[%s1672_s30 + $0x60] sm:$0xff]  ;;  %v437_v14 = vrot.slane %v1684_v6, 2  ;;  %v416_v15 = vrot.slane %v1679_v2, 2  ;;  %v1725_v26 = vld [vmem:[%s1672_s30 + $0x78] sm:$0xff] }
  0x1b   : > { %v379_v11 = vsel %vm374_vm0, %v376_v3, %v378_v4  ;;  %v377_v12 = vsel %vm374_vm0, %v375_v5, %v376_v3  ;;  %v395_v13 = vrot.slane %v1689_v10, 1  ;;  %v436_v18 = vrot.slane %v1689_v10, 2  ;;  %v1728_v27 = vld [vmem:[%s1672_s30 + $0x18] sm:$0xff]  ;;  %v1731_v28 = vld [vmem:[%s1672_s30 + $0x80] sm:$0xff]  ;;  %v337_v36 = vld [vmem:[%s1672_s30 + $0x88] sm:$0x3] }
  0x1c   : > { %484 = vrot.lane.b32.xlu1 %v379_v11, %s1597_s5  ;;  %482 = vrot.lane.b32.xlu0 %v377_v12, %s1597_s5  ;;  %v1699_v16 = vsel %vm374_vm0, %v396_v8, %v398_v9  ;;  %v417_v19 = vrot.slane %v1675_v0, 2  ;;  %v439_v22 = vrot.slane %v334_v7, 2  ;;  %v419_v23 = vrot.slane %v322_v1, 2  ;;  %v1734_v29 = vld [vmem:[%s1672_s30 + $0x20] sm:$0xff]  ;;  %v325_v37 = vld [vmem:[%s1672_s30 + $0x28] sm:$0x3] }
  0x1d   : > { %v1702_v17 = vsel %vm374_vm0, %v395_v13, %v396_v8  ;;  %v1711_v20 = vsel %vm415_vm1, %v436_v18, %v437_v14  ;;  %v400_v30 = vrot.slane %v1725_v26, 1  ;;  %v401_v31 = vrot.slane %v1731_v28, 1  ;;  %v1792_v52 = vld [vmem:[%s1672_s30 + $0x90] sm:$0xff]  ;;  %v1805_v54 = vld [vmem:[%s1672_s30 + $0x98] sm:$0xff]  ;;  %v340_v62 = vld [vmem:[%s1672_s30 + $0xa0] sm:$0x3] }
  0x1e   : > { %v418_v21 = vsel %vm415_vm1, %v416_v15, %v417_v19  ;;  %v1718_v24 = vsel %vm415_vm1, %v437_v14, %v439_v22  ;;  %v420_v25 = vsel %vm415_vm1, %v417_v19, %v419_v23  ;;  %v380_v32 = vrot.slane %v1728_v27, 1  ;;  %v1795_v53 = vld [vmem:[%s1672_s30 + $0x30] sm:$0xff]  ;;  %v1808_v55 = vld [vmem:[%s1672_s30 + $0x38] sm:$0xff]  ;;  %v328_v63 = vld [vmem:[%s1672_s30 + $0x40] sm:$0x3] }
  0x1f   : > { %v381_v33 = vrot.slane %v1734_v29, 1  ;;  %v1749_v34 = vsel %vm374_vm0, %v400_v30, %v401_v31  ;;  %v403_v38 = vrot.slane %v337_v36, 1  ;;  %v383_v39 = vrot.slane %v325_v37, 1  ;;  %2423 = vst [vmem:[#allocation6_spill] sm:$0xff] %v1808_v55  ;;  %v1006_v12 = vld [vmem:[%s2407_s2 + $0x20] sm:$0xf] }
  0x20   : > { %500 = vrot.lane.b32.xlu1 %v1699_v16, %s1597_s5  ;;  %498 = vrot.lane.b32.xlu0 %v1702_v17, %s1597_s5  ;;  %2419 = vst [vmem:[#allocation2_spill] sm:$0xff] %v1749_v34  ;;  %v441_v40 = vrot.slane %v1725_v26, 2  ;;  %v442_v41 = vrot.slane %v1731_v28, 2  ;;  %v421_v44 = vrot.slane %v1728_v27, 2  ;;  %v422_v45 = vrot.slane %v1734_v29, 2  ;;  %v1005_v13 = vld [vmem:[%s2407_s2 + $0x18] sm:$0xff] }
  0x21   : > { %v382_v35 = vsel %vm374_vm0, %v380_v32, %v381_v33  ;;  %v1763_v42 = vsel %vm374_vm0, %v401_v31, %v403_v38  ;;  %v384_v43 = vsel %vm374_vm0, %v381_v33, %v383_v39  ;;  %v444_v48 = vrot.slane %v337_v36, 2  ;;  %1462 = vmatprep.subr.msk.mxu0 %vm1063_vm2, %v1006_v12  ;;  %1496 = vmatprep.subr.msk.mxu1 %vm1063_vm2, %v1006_v12  ;;  %v1004_v18 = vld [vmem:[%s2407_s2 + $0x10] sm:$0xff]  ;;  %v1003_v19 = vld [vmem:[%s2407_s2 + $0x8] sm:$0xff] }
  0x22   : > { %2420 = vst [vmem:[#allocation3_spill] sm:$0xff] %v1763_v42  ;;  %v1772_v46 = vsel %vm415_vm1, %v441_v40, %v442_v41  ;;  %v423_v47 = vsel %vm415_vm1, %v421_v44, %v422_v45  ;;  %v424_v49 = vrot.slane %v325_v37, 2  ;;  %v405_v56 = vrot.slane %v1792_v52, 1  ;;  %1463 = vmatpush3.msk.msra.mxu0 %vm1063_vm2, %v1006_v12  ;;  %1501 = vmatpush3.msk.msra.mxu1 %vm1063_vm2, %v1006_v12  ;;  %v1878_v31 = vld [vmem:[%s1672_s30 + $0xa8] sm:$0xff]  ;;  %v1902_v40 = vld [vmem:[%s1672_s30 + $0xb0] sm:$0xff] }
  0x23   : > { %2421 = vst [vmem:[#allocation4_spill] sm:$0xff] %v1772_v46  ;;  %v1785_v50 = vsel %vm415_vm1, %v442_v41, %v444_v48  ;;  %v406_v57 = vrot.slane %v1805_v54, 1  ;;  %v385_v58 = vrot.slane %v1795_v53, 1  ;;  %v386_v59 = vrot.slane %v1808_v55, 1  ;;  %1464 = vmatprep.subr.mxu0 %v1005_v13  ;;  %1497 = vmatprep.subr.mxu1 %v1005_v13  ;;  %2424 = vst [vmem:[#allocation7_spill] sm:$0xff] %v1878_v31  ;;  %v1881_v32 = vld [vmem:[%s1672_s30 + $0x48] sm:$0xff] }
  0x24   : > { %546 = vrot.lane.b32.xlu1 %v1711_v20, %s1598_s6  ;;  %530 = vrot.lane.b32.xlu0 %v418_v21, %s1598_s6  ;;  %2422 = vst [vmem:[#allocation5_spill] sm:$0xff] %v1785_v50  ;;  %v425_v51 = vsel %vm415_vm1, %v422_v45, %v424_v49  ;;  %v408_v1 = vrot.slane %v340_v62, 1  ;;  %v388_v3 = vrot.slane %v328_v63, 1  ;;  %v446_v4 = vrot.slane %v1792_v52, 2  ;;  %v1002_v21 = vld [vmem:[%s2407_s2] sm:$0xff]  ;;  %2425 = vst [vmem:[#allocation8_spill] sm:$0xff] %v1881_v32 }
  0x25   : > { %v407_v60 = vsel %vm374_vm0, %v405_v56, %v406_v57  ;;  %v387_v61 = vsel %vm374_vm0, %v385_v58, %v386_v59  ;;  %v447_v5 = vrot.slane %v1805_v54, 2  ;;  %v426_v7 = vrot.slane %v1795_v53, 2  ;;  %1465 = vmatpush3.msra.mxu0 %v1005_v13  ;;  %1502 = vmatpush3.msra.mxu1 %v1005_v13  ;;  %2426 = vst [vmem:[#allocation9_spill] sm:$0xff] %v1902_v40  ;;  %v1905_v41 = vld [vmem:[%s1672_s30 + $0x50] sm:$0xff] }
  0x26   : > { %v409_v8 = vsel %vm374_vm0, %v406_v57, %v408_v1  ;;  %v389_v9 = vsel %vm374_vm0, %v386_v59, %v388_v3  ;;  %v427_v11 = vrot.slane %v1808_v55, 2  ;;  %1466 = vmatprep.subr.mxu0 %v1004_v18  ;;  %1498 = vmatprep.subr.mxu1 %v1004_v18  ;;  %v449_v22 = vrot.slane %v340_v62, 2  ;;  %2427 = vst [vmem:[#allocation10_spill] sm:$0xff] %v1905_v41  ;;  %v343_v59 = vld [vmem:[%s1672_s30 + $0xb8] sm:$0x3] }
  0x27   : > { %v448_v14 = vsel %vm415_vm1, %v446_v4, %v447_v5  ;;  %1467 = vmatpush3.msra.mxu0 %v1004_v18  ;;  %1503 = vmatpush3.msra.mxu1 %v1004_v18  ;;  %v429_v23 = vrot.slane %v328_v63, 2  ;;  %v411_v44 = vrot.slane %v1902_v40, 1  ;;  %v390_v45 = vrot.slane %v1881_v32, 1 }
  0x28   : > { %548 = vrot.lane.b32.xlu1 %v1718_v24, %s1598_s6  ;;  %532 = vrot.lane.b32.xlu0 %v420_v25, %s1598_s6  ;;  %v428_v15 = vsel %vm415_vm1, %v426_v7, %v427_v11  ;;  %v450_v25 = vsel %vm415_vm1, %v447_v5, %v449_v22  ;;  %v413_v63 = vrot.slane %v343_v59, 1  ;;  %v432_v12 = vrot.slane %v1905_v41, 2 }
  0x29   : > { %1468 = vmatprep.subr.mxu0 %v1003_v19  ;;  %1499 = vmatprep.subr.mxu1 %v1003_v19  ;;  %v430_v30 = vsel %vm415_vm1, %v427_v11, %v429_v23  ;;  %v431_v11 = vrot.slane %v1881_v32, 2 }
  0x2a   : > { %1469 = vmatpush3.msra.mxu0 %v1003_v19  ;;  %1504 = vmatpush3.msra.mxu1 %v1003_v19  ;;  %v414_v5 = vsel %vm374_vm0, %v411_v44, %v413_v63 }
  0x2b   : > { %1470 = vmatprep.subr.mxu0 %v1002_v21  ;;  %1500 = vmatprep.subr.mxu1 %v1002_v21  ;;  %v433_v18 = vsel %vm415_vm1, %v431_v11, %v432_v12 }
  0x2c   : > { %594 = vrot.lane.b32.xlu1 %v1725_v26, %s1599_s7  ;;  %578 = vrot.lane.b32.xlu0 %v1728_v27, %s1599_s7 }
  0x2d   : > { %1471 = vmatpush3.msra.mxu0 %v1002_v21  ;;  %1505 = vmatpush3.msra.mxu1 %v1002_v21 }
  0x30   : > { %596 = vrot.lane.b32.xlu1 %v1731_v28, %s1599_s7  ;;  %580 = vrot.lane.b32.xlu0 %v1734_v29, %s1599_s7 }
  0x34   : > { %642 = vrot.lane.b32.xlu1 %v1749_v34, %s1600_s8  ;;  %626 = vrot.lane.b32.xlu0 %v382_v35, %s1600_s8 }
  0x38   : > { %502 = vrot.lane.b32.xlu1 %v1749_v34, %s1597_s5  ;;  %486 = vrot.lane.b32.xlu0 %v382_v35, %s1597_s5 }
  0x3c   : > { %644 = vrot.lane.b32.xlu1 %v1763_v42, %s1600_s8  ;;  %628 = vrot.lane.b32.xlu0 %v384_v43, %s1600_s8 }
  0x40   : > { %690 = vrot.lane.b32.xlu1 %v1772_v46, %s1601_s9  ;;  %674 = vrot.lane.b32.xlu0 %v423_v47, %s1601_s9 }
  0x44   : > { %504 = vrot.lane.b32.xlu1 %v1763_v42, %s1597_s5  ;;  %488 = vrot.lane.b32.xlu0 %v384_v43, %s1597_s5  ;;  %v410_v43 = vrot.slane %v1878_v31, 1 }
  0x48   : > { %550 = vrot.lane.b32.xlu1 %v1772_v46, %s1598_s6  ;;  %534 = vrot.lane.b32.xlu0 %v423_v47, %s1598_s6  ;;  %v391_v47 = vrot.slane %v1905_v41, 1 }
  0x4a   : > { %v392_v56 = vsel %vm374_vm0, %v390_v45, %v391_v47 }
  0x4c   : > { %692 = vrot.lane.b32.xlu1 %v1785_v50, %s1601_s9  ;;  %676 = vrot.lane.b32.xlu0 %v425_v51, %s1601_s9 }
  0x50   : > { %738 = vrot.lane.b32.xlu1 %v1792_v52, %s1602_s10  ;;  %722 = vrot.lane.b32.xlu0 %v1795_v53, %s1602_s10 }
  0x54   : > { %552 = vrot.lane.b32.xlu1 %v1785_v50, %s1598_s6  ;;  %536 = vrot.lane.b32.xlu0 %v425_v51, %s1598_s6  ;;  %v412_v51 = vsel %vm374_vm0, %v410_v43, %v411_v44  ;;  %v454_v43 = vrot.slane %v343_v59, 2 }
  0x58   : > { %598 = vrot.lane.b32.xlu1 %v1792_v52, %s1599_s7  ;;  %582 = vrot.lane.b32.xlu0 %v1795_v53, %s1599_s7 }
  0x5c   : > { %740 = vrot.lane.b32.xlu1 %v1805_v54, %s1602_s10  ;;  %724 = vrot.lane.b32.xlu0 %v1808_v55, %s1602_s10 }
  0x60   : > { %786 = vrot.lane.b32.xlu1 %v407_v60, %s1603_s11  ;;  %770 = vrot.lane.b32.xlu0 %v387_v61, %s1603_s11 }
  0x64   : > { %600 = vrot.lane.b32.xlu1 %v1805_v54, %s1599_s7  ;;  %584 = vrot.lane.b32.xlu0 %v1808_v55, %s1599_s7 }
  0x68   : > { %646 = vrot.lane.b32.xlu1 %v407_v60, %s1600_s8  ;;  %630 = vrot.lane.b32.xlu0 %v387_v61, %s1600_s8 }
  0x6c   : > { %788 = vrot.lane.b32.xlu1 %v409_v8, %s1603_s11  ;;  %772 = vrot.lane.b32.xlu0 %v389_v9, %s1603_s11 }
  0x70   : > { %834 = vrot.lane.b32.xlu1 %v448_v14, %s1604_s28  ;;  %818 = vrot.lane.b32.xlu0 %v428_v15, %s1604_s28 }
  0x74   : > { %506 = vrot.lane.b32.xlu1 %v407_v60, %s1597_s5  ;;  %490 = vrot.lane.b32.xlu0 %v387_v61, %s1597_s5  ;;  %v331_v60 = vld [vmem:[%s1672_s30 + $0x58] sm:$0x3]  ;;  %s1440_s30 = sadd.s32 8, %s1660_s22  ;;  %s2452_s22 = smov (!%p312_p8, %s1660_s22), 15 }
  0x75   : > { %v393_v1 = vrot.slane %v331_v60, 1  ;;  %p299_p7 = scmp.lt.s32.totalorder %s1440_s30, 17  ;;  %v434_v44 = vrot.slane %v331_v60, 2 }
  0x77   : > { %v394_v7 = vsel %vm374_vm0, %v391_v47, %v393_v1  ;;  %s2450_s30 = smov (!%p299_p7, %s1440_s30), 17 }
  0x78   : > { %648 = vrot.lane.b32.xlu1 %v409_v8, %s1600_s8  ;;  %632 = vrot.lane.b32.xlu0 %v389_v9, %s1600_s8  ;;  %s1508_s13 = smul.u32 3, %s2450_s30 }
  0x7a   : > { %s303_s14 = sadd.s32 %s1508_s13, %s1507_s24  ;;  %s1409_s24 = sshll.u32 %s2452_s22, 1 }
  0x7b   : > { %s1407_s15 = sshll.u32 %s303_s14, 3 }
  0x7c   : > { %694 = vrot.lane.b32.xlu1 %v448_v14, %s1601_s9  ;;  %678 = vrot.lane.b32.xlu0 %v428_v15, %s1601_s9  ;;  %s2007_s26 = scalar_lea.vmem %s2406_s1, %s1407_s15 }
  0x80   : > { %836 = vrot.lane.b32.xlu1 %v450_v25, %s1604_s28  ;;  %820 = vrot.lane.b32.xlu0 %v430_v30, %s1604_s28 }
  0x84   : > { %508 = vrot.lane.b32.xlu1 %v409_v8, %s1597_s5  ;;  %492 = vrot.lane.b32.xlu0 %v389_v9, %s1597_s5  ;;  %v451_v8 = vrot.slane %v1878_v31, 2  ;;  %v452_v9 = vrot.slane %v1902_v40, 2 }
  0x88   : > { %554 = vrot.lane.b32.xlu1 %v448_v14, %s1598_s6  ;;  %538 = vrot.lane.b32.xlu0 %v428_v15, %s1598_s6  ;;  %v453_v15 = vsel %vm415_vm1, %v451_v8, %v452_v9 }
  0x8c   : > { %696 = vrot.lane.b32.xlu1 %v450_v25, %s1601_s9  ;;  %680 = vrot.lane.b32.xlu0 %v430_v30, %s1601_s9 }
  0x8e   : > { %v1883_v33 = vpop.permute.xlu1 %484  ;;  %v1885_v35 = vpop.permute.xlu0 %482 }
  0x90   : > { %742 = vrot.lane.b32.xlu1 %v1878_v31, %s1602_s10  ;;  %726 = vrot.lane.b32.xlu0 %v1881_v32, %s1602_s10 }
  0x92   : > { %v1891_v36 = vpop.permute.xlu1 %500  ;;  %v1893_v37 = vpop.permute.xlu0 %498 }
  0x94   : > { %556 = vrot.lane.b32.xlu1 %v450_v25, %s1598_s6  ;;  %540 = vrot.lane.b32.xlu0 %v430_v30, %s1598_s6 }
  0x96   : > { %v1897_v38 = vpop.permute.xlu1 %546  ;;  %v1899_v39 = vpop.permute.xlu0 %530 }
  0x98   : > { %602 = vrot.lane.b32.xlu1 %v1878_v31, %s1599_s7  ;;  %586 = vrot.lane.b32.xlu0 %v1881_v32, %s1599_s7 }
  0x9a   : > { %v1915_v48 = vpop.permute.xlu1 %548  ;;  %v1917_v49 = vpop.permute.xlu0 %532 }
  0x9c   : > { %744 = vrot.lane.b32.xlu1 %v1902_v40, %s1602_s10  ;;  %728 = vrot.lane.b32.xlu0 %v1905_v41, %s1602_s10 }
  0x9e   : > { %v1925_v57 = vpop.permute.xlu1 %594  ;;  %v1927_v58 = vpop.permute.xlu0 %578 }
  0xa0   : > { %790 = vrot.lane.b32.xlu1 %v412_v51, %s1603_s11  ;;  %774 = vrot.lane.b32.xlu0 %v392_v56, %s1603_s11 }
  0xa2   : > { %v1933_v61 = vpop.permute.xlu1 %596  ;;  %v1935_v62 = vpop.permute.xlu0 %580 }
  0xa4   : > { %604 = vrot.lane.b32.xlu1 %v1902_v40, %s1599_s7  ;;  %588 = vrot.lane.b32.xlu0 %v1905_v41, %s1599_s7  ;;  %v2029_v40 = vld [vmem:[%s2007_s26 + $0x8] sm:$0xff] }
  0xa5   : > { %v460_v46 = vrot.slane %v2029_v40, 1 }
  0xa6   : > { %v1941_v3 = vpop.permute.xlu1 %642  ;;  %v1943_v4 = vpop.permute.xlu0 %626 }
  0xa8   : > { %650 = vrot.lane.b32.xlu1 %v412_v51, %s1600_s8  ;;  %634 = vrot.lane.b32.xlu0 %v392_v56, %s1600_s8 }
  0xaa   : > { %v1953_v13 = vpop.permute.xlu1 %502  ;;  %v1955_v14 = vpop.permute.xlu0 %486 }
  0xab   : > { %v877_v32 = vsel %vm866_vm3, %v1725_v26, %v1953_v13  ;;  %v869_v31 = vsel %vm866_vm3, %v1728_v27, %v1955_v14 }
  0xac   : > { %792 = vrot.lane.b32.xlu1 %v414_v5, %s1603_s11  ;;  %776 = vrot.lane.b32.xlu0 %v394_v7, %s1603_s11 }
  0xae   : > { %v1961_v19 = vpop.permute.xlu1 %644  ;;  %v1963_v21 = vpop.permute.xlu0 %628 }
  0xb0   : > { %838 = vrot.lane.b32.xlu1 %v453_v15, %s1604_s28  ;;  %822 = vrot.lane.b32.xlu0 %v433_v18, %s1604_s28 }
  0xb2   : > { %v1967_v22 = vpop.permute.xlu1 %690  ;;  %v1969_v23 = vpop.permute.xlu0 %674 }
  0xb4   : > { %510 = vrot.lane.b32.xlu1 %v412_v51, %s1597_s5  ;;  %494 = vrot.lane.b32.xlu0 %v392_v56, %s1597_s5  ;;  %v455_v51 = vsel %vm415_vm1, %v452_v9, %v454_v43  ;;  %v435_v56 = vsel %vm415_vm1, %v432_v12, %v434_v44 }
  0xb6   : > { %v1974_v25 = vpop.permute.xlu1 %504  ;;  %v1976_v30 = vpop.permute.xlu0 %488 }
  0xb8   : > { %652 = vrot.lane.b32.xlu1 %v414_v5, %s1600_s8  ;;  %636 = vrot.lane.b32.xlu0 %v394_v7, %s1600_s8 }
  0xba   : > { %v551_v45 = vpop.permute.xlu1 %550  ;;  %v535_v47 = vpop.permute.xlu0 %534 }
  0xbc   : > { %698 = vrot.lane.b32.xlu1 %v453_v15, %s1601_s9  ;;  %682 = vrot.lane.b32.xlu0 %v433_v18, %s1601_s9 }
  0xbe   : > { %v1984_v63 = vpop.permute.xlu1 %692  ;;  %v1986_v1 = vpop.permute.xlu0 %676 }
  0xc0   : > { %840 = vrot.lane.b32.xlu1 %v455_v51, %s1604_s28  ;;  %824 = vrot.lane.b32.xlu0 %v435_v56, %s1604_s28 }
  0xc2   : > { %v1990_v59 = vpop.permute.xlu1 %738  ;;  %v1992_v60 = vpop.permute.xlu0 %722 }
  0xc4   : > { %512 = vrot.lane.b32.xlu1 %v414_v5, %s1597_s5  ;;  %496 = vrot.lane.b32.xlu0 %v394_v7, %s1597_s5  ;;  %v2012_v5 = vld [vmem:[%s2007_s26] sm:$0xff]  ;;  %s1410_s5 = sshll.u32 %s2448_s16, 5 }
  0xc5   : > { %v459_v50 = vrot.slane %v2012_v5, 1 }
  0xc6   : > { %v1998_v8 = vpop.permute.xlu1 %552  ;;  %v2000_v9 = vpop.permute.xlu0 %536 }
  0xc8   : > { %558 = vrot.lane.b32.xlu1 %v453_v15, %s1598_s6  ;;  %542 = vrot.lane.b32.xlu0 %v433_v18, %s1598_s6 }
  0xca   : > { %v599_v11 = vpop.permute.xlu1 %598  ;;  %v583_v12 = vpop.permute.xlu0 %582 }
  0xcc   : > { %700 = vrot.lane.b32.xlu1 %v455_v51, %s1601_s9  ;;  %684 = vrot.lane.b32.xlu0 %v435_v56, %s1601_s9 }
  0xce   : > { %v2014_v7 = vpop.permute.xlu1 %740  ;;  %v2016_v15 = vpop.permute.xlu0 %724 }
  0xd0   : > { %746 = vrot.lane.b32.xlu1 %v2012_v5, %s1602_s10  ;;  %730 = vrot.lane.b32.xlu0 %v1689_v10, %s1602_s10 }
  0xd2   : > { %v787_v18 = vpop.permute.xlu1 %786  ;;  %v771_v43 = vpop.permute.xlu0 %770 }
  0xd4   : > { %560 = vrot.lane.b32.xlu1 %v455_v51, %s1598_s6  ;;  %544 = vrot.lane.b32.xlu0 %v435_v56, %s1598_s6  ;;  %v894_v51 = vsel %vm883_vm4, %v877_v32, %v551_v45  ;;  %v886_v56 = vsel %vm883_vm4, %v869_v31, %v535_v47  ;;  %v867_v31 = vsel %vm866_vm3, %v1679_v2, %v1885_v35  ;;  %s316_s6 = sadd.s32 %s1410_s5, %s1409_s24 }
  0xd5   : > { %v911_v13 = vsel %vm900_vm5, %v894_v51, %v599_v11  ;;  %v903_v42 = vsel %vm900_vm5, %v886_v56, %v583_v12  ;;  %v875_v32 = vsel %vm866_vm3, %v1689_v10, %v1893_v37  ;;  %v461_v47 = vsel %vm374_vm0, %v459_v50, %v460_v46 }
  0xd6   : > { %v2024_v44 = vpop.permute.xlu1 %600  ;;  %v2026_v41 = vpop.permute.xlu0 %584  ;;  %v892_v45 = vsel %vm883_vm4, %v875_v32, %v1897_v38  ;;  %v465_v32 = vrot.slane %v2029_v40, 2 }
  0xd7   : > { %v909_v2 = vsel %vm900_vm5, %v892_v45, %v1925_v57 }
  0xd8   : > { %606 = vrot.lane.b32.xlu1 %v2012_v5, %s1599_s7  ;;  %590 = vrot.lane.b32.xlu0 %v1689_v10, %s1599_s7  ;;  %v926_v11 = vsel %vm917_vm6, %v909_v2, %v1941_v3 }
  0xd9   : > { %v943_v50 = vsel %vm934_vm7, %v926_v11, %v1967_v22 }
  0xda   : > { %v647_v27 = vpop.permute.xlu1 %646  ;;  %v631_v14 = vpop.permute.xlu0 %630  ;;  %v960_v57 = vsel %vm951_vm8, %v943_v50, %v1990_v59 }
  0xdb   : > { %v2048_v34 = vsel %vm917_vm6, %v911_v13, %v647_v27  ;;  %v2051_v55 = vsel %vm917_vm6, %v903_v42, %v631_v14  ;;  %v884_v42 = vsel %vm883_vm4, %v867_v31, %v1899_v39  ;;  %v977_v3 = vsel %vm968_vm9, %v960_v57, %v787_v18 }
  0xdc   : > { %748 = vrot.lane.b32.xlu1 %v2029_v40, %s1602_s10  ;;  %732 = vrot.lane.b32.xlu0 %v1684_v6, %s1602_s10  ;;  %v901_v10 = vsel %vm900_vm5, %v884_v42, %v1927_v58  ;;  %v870_v13 = vsel %vm866_vm3, %v1734_v29, %v1976_v30  ;;  %v464_v27 = vrot.slane %v2012_v5, 2 }
  0xdd   : > { %v918_v38 = vsel %vm917_vm6, %v901_v10, %v1943_v4  ;;  %v887_v31 = vsel %vm883_vm4, %v870_v13, %v2000_v9 }
  0xde   : > { %v789_v35 = vpop.permute.xlu1 %788  ;;  %v773_v37 = vpop.permute.xlu0 %772  ;;  %v935_v39 = vsel %vm934_vm7, %v918_v38, %v1969_v23  ;;  %v346_v23 = vld [vmem:[%s2007_s26 + $0x10] sm:$0x3]  ;;  %v904_v30 = vsel %vm900_vm5, %v887_v31, %v2026_v41 }
  0xdf   : > { %v952_v58 = vsel %vm951_vm8, %v935_v39, %v1992_v60  ;;  %v462_v59 = vrot.slane %v346_v23, 1 }
  0xe0   : > { %794 = vrot.lane.b32.xlu1 %v461_v47, %s1603_s11  ;;  %778 = vrot.lane.b32.xlu0 %v1702_v17, %s1603_s11  ;;  %v969_v4 = vsel %vm968_vm9, %v952_v58, %v771_v43  ;;  %v878_v43 = vsel %vm866_vm3, %v1731_v28, %v1974_v25 }
  0xe1   : > { %v895_v14 = vsel %vm883_vm4, %v878_v43, %v1998_v8  ;;  %v463_v25 = vsel %vm374_vm0, %v460_v46, %v462_v59  ;;  %v876_v46 = vsel %vm866_vm3, %v1684_v6, %v1891_v36 }
  0xe2   : > { %v835_v22 = vpop.permute.xlu1 %834  ;;  %v819_v12 = vpop.permute.xlu0 %818  ;;  %v912_v29 = vsel %vm900_vm5, %v895_v14, %v2024_v44  ;;  %v466_v44 = vsel %vm415_vm1, %v464_v27, %v465_v32 }
  0xe3   : > { %v994_v51 = vsel %vm985_vm10, %v977_v3, %v835_v22  ;;  %v986_v56 = vsel %vm985_vm10, %v969_v4, %v819_v12  ;;  %v348_v4 = vld [vmem:[%s2007_s26 + $0x20] sm:$0xff] }
  0xe4   : > { %608 = vrot.lane.b32.xlu1 %v2029_v40, %s1599_s7  ;;  %1484 = vmatprep.mubr.msk.f32.mxu1 %vm1014_vm11, %v994_v51  ;;  %v893_v40 = vsel %vm883_vm4, %v876_v46, %v1915_v48  ;;  %v473_v12 = vrot.slane %v348_v4, 1  ;;  %v2428_v51 = vld [vmem:[#allocation6_spill] sm:$0xff] }
  0xe5   : > { %592 = vrot.lane.b32.xlu0 %v1684_v6, %s1599_s7  ;;  %1472 = vmatprep.mubr.msk.f32.mxu0 %vm1014_vm11, %v986_v56 }
  0xe6   : > { %v507_v60 = vpop.permute.xlu1 %506  ;;  %v491_v18 = vpop.permute.xlu0 %490 }
  0xe7   : > { %v879_v11 = vsel %vm866_vm3, %v1792_v52, %v507_v60  ;;  %v347_v52 = vld [vmem:[%s2007_s26 + $0x18] sm:$0xff] }
  0xe8   : > { %654 = vrot.lane.b32.xlu1 %v461_v47, %s1600_s8  ;;  %v472_v22 = vrot.slane %v347_v52, 1 }
  0xe9   : > { %638 = vrot.lane.b32.xlu0 %v1702_v17, %s1600_s8  ;;  %v868_v17 = vsel %vm866_vm3, %v1675_v0, %v1883_v33  ;;  %v910_v0 = vsel %vm900_vm5, %v893_v40, %v1933_v61 }
  0xea   : > { %v649_v5 = vpop.permute.xlu1 %648  ;;  %v633_v45 = vpop.permute.xlu0 %632  ;;  %v885_v41 = vsel %vm883_vm4, %v868_v17, %v1917_v49  ;;  %v927_v48 = vsel %vm917_vm6, %v910_v0, %v1961_v19 }
  0xeb   : > { %v2119_v8 = vsel %vm917_vm6, %v912_v29, %v649_v5  ;;  %v2122_v9 = vsel %vm917_vm6, %v904_v30, %v633_v45  ;;  %v902_v33 = vsel %vm900_vm5, %v885_v41, %v1935_v62  ;;  %v944_v42 = vsel %vm934_vm7, %v927_v48, %v1984_v63  ;;  %v2429_v29 = vld [vmem:[#allocation2_spill] sm:$0xff]  ;;  %v2430_v45 = vld [vmem:[#allocation3_spill] sm:$0xff] }
  0xec   : > { %796 = vrot.lane.b32.xlu1 %v463_v25, %s1603_s11  ;;  %v919_v49 = vsel %vm917_vm6, %v902_v33, %v1963_v21  ;;  %v961_v61 = vsel %vm951_vm8, %v944_v42, %v2014_v7  ;;  %v467_v7 = vrot.slane %v346_v23, 2 }
  0xed   : > { %780 = vrot.lane.b32.xlu0 %v1699_v16, %s1603_s11  ;;  %v936_v47 = vsel %vm934_vm7, %v919_v49, %v1986_v1  ;;  %v978_v19 = vsel %vm968_vm9, %v961_v61, %v789_v35 }
  0xee   : > { %v2142_v6 = vpop.permute.xlu1 %694  ;;  %v2144_v36 = vpop.permute.xlu0 %678  ;;  %v953_v62 = vsel %vm951_vm8, %v936_v47, %v2016_v15  ;;  %v2432_v47 = vld [vmem:[#allocation5_spill] sm:$0xff] }
  0xef   : > { %v970_v21 = vsel %vm968_vm9, %v953_v62, %v773_v37  ;;  %v468_v37 = vsel %vm415_vm1, %v465_v32, %v467_v7  ;;  %v477_v32 = vrot.slane %v347_v52, 2 }
  0xf0   : > { %842 = vrot.lane.b32.xlu1 %v466_v44, %s1604_s28 }
  0xf1   : > { %826 = vrot.lane.b32.xlu0 %v1711_v20, %s1604_s28 }
  0xf2   : > { %v837_v2 = vpop.permute.xlu1 %836  ;;  %v821_v63 = vpop.permute.xlu0 %820 }
  0xf3   : > { %v995_v10 = vsel %vm985_vm10, %v978_v19, %v837_v2  ;;  %v987_v1 = vsel %vm985_vm10, %v970_v21, %v821_v63 }
  0xf4   : > { %656 = vrot.lane.b32.xlu1 %v463_v25, %s1600_s8  ;;  %1485 = vmatmul.mubr.msk.f32.vlgmr.msra.gmra.mxu1 %vm1014_vm11, %v995_v10  ;;  %v478_v25 = vrot.slane %v348_v4, 2  ;;  %v945_v10 = vsel %vm934_vm7, %v2048_v34, %v2142_v6 }
  0xf5   : > { %640 = vrot.lane.b32.xlu0 %v1699_v16, %s1600_s8  ;;  %1473 = vmatmul.mubr.msk.f32.vlgmr.msra.gmra.mxu0 %vm1014_vm11, %v987_v1  ;;  %v871_v16 = vsel %vm866_vm3, %v1795_v53, %v491_v18  ;;  %v937_v1 = vsel %vm934_vm7, %v2051_v55, %v2144_v36 }
  0xf6   : > { %v509_v15 = vpop.permute.xlu1 %508  ;;  %v493_v35 = vpop.permute.xlu0 %492  ;;  %v479_v17 = vsel %vm415_vm1, %v477_v32, %v478_v25 }
  0xf7   : > { %v880_v23 = vsel %vm866_vm3, %v1805_v54, %v509_v15  ;;  %v872_v56 = vsel %vm866_vm3, %v2428_v51, %v493_v35 }
  0xf8   : > { %702 = vrot.lane.b32.xlu1 %v466_v44, %s1601_s9  ;;  %v2431_v44 = vld [vmem:[#allocation4_spill] sm:$0xff] }
  0xf9   : > { %686 = vrot.lane.b32.xlu0 %v1711_v20, %s1601_s9 }
  0xfa   : > { %v555_v38 = vpop.permute.xlu1 %554  ;;  %v539_v50 = vpop.permute.xlu0 %538 }
  0xfb   : > { %v896_v39 = vsel %vm883_vm4, %v879_v11, %v555_v38  ;;  %v888_v57 = vsel %vm883_vm4, %v871_v16, %v539_v50 }
  0xfc   : > { %844 = vrot.lane.b32.xlu1 %v468_v37, %s1604_s28 }
  0xfd   : > { %828 = vrot.lane.b32.xlu0 %v1718_v24, %s1604_s28 }
  0xfe   : > { %v2183_v20 = vpop.permute.xlu1 %696  ;;  %v2185_v58 = vpop.permute.xlu0 %680 }
 0x100   : > { %704 = vrot.lane.b32.xlu1 %v468_v37, %s1601_s9 }
 0x101   : > { %688 = vrot.lane.b32.xlu0 %v1718_v24, %s1601_s9  ;;  %v349_v24 = vld [vmem:[%s2007_s26 + $0x28] sm:$0x3]  ;;  %s1411_s9 = sshll.u32 %s316_s6, 3 }
 0x102   : > { %v743_v53 = vpop.permute.xlu1 %742  ;;  %v727_v3 = vpop.permute.xlu0 %726  ;;  %v475_v13 = vrot.slane %v349_v24, 1  ;;  %v480_v46 = vrot.slane %v349_v24, 2  ;;  %s2342_s27 = scalar_lea.vmem %s2409_s4, %s1411_s9 }
 0x103   : > { %v962_v7 = vsel %vm951_vm8, %v945_v10, %v743_v53  ;;  %v954_v15 = vsel %vm951_vm8, %v937_v1, %v727_v3  ;;  %v946_v3 = vsel %vm934_vm7, %v2119_v8, %v2183_v20  ;;  %v2433_v20 = vld [vmem:[#allocation7_spill] sm:$0xff] }
 0x104   : > { %750 = vrot.lane.b32.xlu1 %v347_v52, %s1602_s10  ;;  %v476_v30 = vsel %vm374_vm0, %v473_v12, %v475_v13  ;;  %v481_v0 = vsel %vm415_vm1, %v478_v25, %v480_v46 }
 0x105   : > { %734 = vrot.lane.b32.xlu0 %v1725_v26, %s1602_s10  ;;  %v474_v26 = vsel %vm374_vm0, %v472_v22, %v473_v12 }
 0x106   : > { %v557_v59 = vpop.permute.xlu1 %556  ;;  %v541_v60 = vpop.permute.xlu0 %540 }
 0x107   : > { %v897_v18 = vsel %vm883_vm4, %v880_v23, %v557_v59  ;;  %v889_v43 = vsel %vm883_vm4, %v872_v56, %v541_v60 }
 0x108   : > { %752 = vrot.lane.b32.xlu1 %v348_v4, %s1602_s10  ;;  %v938_v4 = vsel %vm934_vm7, %v2122_v9, %v2185_v58 }
 0x109   : > { %736 = vrot.lane.b32.xlu0 %v1731_v28, %s1602_s10 }
 0x10a   : > { %v603_v27 = vpop.permute.xlu1 %602  ;;  %v587_v54 = vpop.permute.xlu0 %586 }
 0x10b   : > { %v913_v14 = vsel %vm900_vm5, %v896_v39, %v603_v27  ;;  %v905_v31 = vsel %vm900_vm5, %v888_v57, %v587_v54 }
 0x10c   : > { %798 = vrot.lane.b32.xlu1 %v474_v26, %s1603_s11 }
 0x10d   : > { %782 = vrot.lane.b32.xlu0 %v2429_v29, %s1603_s11 }
 0x10e   : > { %v745_v5 = vpop.permute.xlu1 %744  ;;  %v729_v28 = vpop.permute.xlu0 %728 }
 0x10f   : > { %v963_v22 = vsel %vm951_vm8, %v946_v3, %v745_v5  ;;  %v955_v12 = vsel %vm951_vm8, %v938_v4, %v729_v28 }
 0x110   : > { %800 = vrot.lane.b32.xlu1 %v476_v30, %s1603_s11 }
 0x111   : > { %784 = vrot.lane.b32.xlu0 %v2430_v45, %s1603_s11 }
 0x112   : > { %v791_v40 = vpop.permute.xlu1 %790  ;;  %v775_v41 = vpop.permute.xlu0 %774 }
 0x113   : > { %v979_v35 = vsel %vm968_vm9, %v962_v7, %v791_v40  ;;  %v971_v37 = vsel %vm968_vm9, %v954_v15, %v775_v41 }
 0x114   : > { %846 = vrot.lane.b32.xlu1 %v479_v17, %s1604_s28 }
 0x115   : > { %830 = vrot.lane.b32.xlu0 %v2431_v44, %s1604_s28 }
 0x116   : > { %v605_v33 = vpop.permute.xlu1 %604  ;;  %v589_v48 = vpop.permute.xlu0 %588 }
 0x117   : > { %v914_v49 = vsel %vm900_vm5, %v897_v18, %v605_v33  ;;  %v906_v42 = vsel %vm900_vm5, %v889_v43, %v589_v48  ;;  %v2434_v18 = vld [vmem:[#allocation8_spill] sm:$0xff] }
 0x118   : > { %848 = vrot.lane.b32.xlu1 %v481_v0, %s1604_s28 }
 0x119   : > { %832 = vrot.lane.b32.xlu0 %v2432_v47, %s1604_s28 }
 0x11a   : > { %v651_v61 = vpop.permute.xlu1 %650  ;;  %v635_v62 = vpop.permute.xlu0 %634 }
 0x11b   : > { %v2226_v19 = vsel %vm917_vm6, %v913_v14, %v651_v61  ;;  %v2229_v21 = vsel %vm917_vm6, %v905_v31, %v635_v62 }
 0x11e   : > { %v793_v2 = vpop.permute.xlu1 %792  ;;  %v777_v63 = vpop.permute.xlu0 %776 }
 0x11f   : > { %v980_v23 = vsel %vm968_vm9, %v963_v22, %v793_v2  ;;  %v972_v51 = vsel %vm968_vm9, %v955_v12, %v777_v63 }
 0x122   : > { %v839_v11 = vpop.permute.xlu1 %838  ;;  %v823_v16 = vpop.permute.xlu0 %822 }
 0x123   : > { %v996_v38 = vsel %vm985_vm10, %v979_v35, %v839_v11  ;;  %v988_v50 = vsel %vm985_vm10, %v971_v37, %v823_v16 }
 0x124   : > { %1475 = vmatprep.mubr.msk.f32.mxu0 %vm1014_vm11, %v988_v50  ;;  %1487 = vmatprep.mubr.msk.f32.mxu1 %vm1014_vm11, %v996_v38 }
 0x126   : > { %v511_v34 = vpop.permute.xlu1 %510  ;;  %v495_v55 = vpop.permute.xlu0 %494 }
 0x127   : > { %v881_v58 = vsel %vm866_vm3, %v2433_v20, %v511_v34  ;;  %v873_v43 = vsel %vm866_vm3, %v2434_v18, %v495_v55 }
 0x12a   : > { %v653_v6 = vpop.permute.xlu1 %652  ;;  %v637_v36 = vpop.permute.xlu0 %636 }
 0x12b   : > { %v931_v39 = vsel %vm917_vm6, %v914_v49, %v653_v6  ;;  %v923_v57 = vsel %vm917_vm6, %v906_v42, %v637_v36 }
 0x12e   : > { %v699_v52 = vpop.permute.xlu1 %698  ;;  %v683_v53 = vpop.permute.xlu0 %682 }
 0x12f   : > { %v947_v42 = vsel %vm934_vm7, %v2226_v19, %v699_v52  ;;  %v939_v47 = vsel %vm934_vm7, %v2229_v21, %v683_v53 }
 0x132   : > { %v841_v56 = vpop.permute.xlu1 %840  ;;  %v825_v59 = vpop.permute.xlu0 %824 }
 0x133   : > { %v997_v60 = vsel %vm985_vm10, %v980_v23, %v841_v56  ;;  %v989_v24 = vsel %vm985_vm10, %v972_v51, %v825_v59 }
 0x134   : > { %1476 = vmatmul.mubr.msk.f32.gmra.mxu0 %vm1014_vm11, %v989_v24  ;;  %1488 = vmatmul.mubr.msk.f32.gmra.mxu1 %vm1014_vm11, %v997_v60 }
 0x136   : > { %v2261_v8 = vpop.permute.xlu1 %512  ;;  %v2263_v9 = vpop.permute.xlu0 %496 }
 0x13a   : > { %v559_v26 = vpop.permute.xlu1 %558  ;;  %v543_v13 = vpop.permute.xlu0 %542 }
 0x13b   : > { %v898_v27 = vsel %vm883_vm4, %v881_v58, %v559_v26  ;;  %v890_v54 = vsel %vm883_vm4, %v873_v43, %v543_v13  ;;  %v2435_v58 = vld [vmem:[#allocation9_spill] sm:$0xff]  ;;  %v2436_v13 = vld [vmem:[#allocation10_spill] sm:$0xff] }
 0x13c   : > { %v882_v18 = vsel %vm866_vm3, %v2435_v58, %v2261_v8 }
 0x13e   : > { %v701_v14 = vpop.permute.xlu1 %700  ;;  %v685_v31 = vpop.permute.xlu0 %684 }
 0x13f   : > { %v948_v11 = vsel %vm934_vm7, %v931_v39, %v701_v14  ;;  %v940_v16 = vsel %vm934_vm7, %v923_v57, %v685_v31  ;;  %v874_v14 = vsel %vm866_vm3, %v2436_v13, %v2263_v9 }
 0x142   : > { %v747_v32 = vpop.permute.xlu1 %746  ;;  %v731_v25 = vpop.permute.xlu0 %730 }
 0x143   : > { %v964_v61 = vsel %vm951_vm8, %v947_v42, %v747_v32  ;;  %v956_v62 = vsel %vm951_vm8, %v939_v47, %v731_v25 }
 0x146   : > { %v561_v29 = vpop.permute.xlu1 %560  ;;  %v545_v30 = vpop.permute.xlu0 %544 }
 0x147   : > { %v891_v32 = vsel %vm883_vm4, %v874_v14, %v545_v30 }
 0x14a   : > { %v607_v5 = vpop.permute.xlu1 %606  ;;  %v591_v28 = vpop.permute.xlu0 %590 }
 0x14b   : > { %v915_v56 = vsel %vm900_vm5, %v898_v27, %v607_v5  ;;  %v907_v60 = vsel %vm900_vm5, %v890_v54, %v591_v28  ;;  %v899_v27 = vsel %vm883_vm4, %v882_v18, %v561_v29 }
 0x14e   : > { %v749_v45 = vpop.permute.xlu1 %748  ;;  %v733_v17 = vpop.permute.xlu0 %732 }
 0x14f   : > { %v965_v38 = vsel %vm951_vm8, %v948_v11, %v749_v45  ;;  %v957_v50 = vsel %vm951_vm8, %v940_v16, %v733_v17 }
 0x152   : > { %v795_v46 = vpop.permute.xlu1 %794  ;;  %v779_v40 = vpop.permute.xlu0 %778 }
 0x153   : > { %v981_v2 = vsel %vm968_vm9, %v964_v61, %v795_v46  ;;  %v973_v10 = vsel %vm968_vm9, %v956_v62, %v779_v40 }
 0x156   : > { %v609_v41 = vpop.permute.xlu1 %608 }
 0x157   : > { %v593_v44 = vpop.permute.xlu0 %592  ;;  %v916_v25 = vsel %vm900_vm5, %v899_v27, %v609_v41 }
 0x158   : > { %v908_v45 = vsel %vm900_vm5, %v891_v32, %v593_v44 }
 0x15a   : > { %v655_v0 = vpop.permute.xlu1 %654 }
 0x15b   : > { %v639_v33 = vpop.permute.xlu0 %638  ;;  %v932_v24 = vsel %vm917_vm6, %v915_v56, %v655_v0 }
 0x15c   : > { %v924_v43 = vsel %vm917_vm6, %v907_v60, %v639_v33 }
 0x15e   : > { %v797_v48 = vpop.permute.xlu1 %796 }
 0x15f   : > { %v781_v49 = vpop.permute.xlu0 %780  ;;  %v982_v34 = vsel %vm968_vm9, %v965_v38, %v797_v48 }
 0x160   : > { %v974_v6 = vsel %vm968_vm9, %v957_v50, %v781_v49 }
 0x162   : > { %v843_v63 = vpop.permute.xlu1 %842 }
 0x163   : > { %v998_v1 = vsel %vm985_vm10, %v981_v2, %v843_v63  ;;  %v827_v7 = vpop.permute.xlu0 %826  ;;  %v2335_v2 = vld [vmem:[%s2408_s3] ss:$0 sm:$0xff] }
 0x164   : > { %v990_v15 = vsel %vm985_vm10, %v973_v10, %v827_v7  ;;  %1490 = vmatprep.mubr.msk.f32.mxu1 %vm1014_vm11, %v998_v1 }
 0x165   : > { %1478 = vmatprep.mubr.msk.f32.mxu0 %vm1014_vm11, %v990_v15 }
 0x166   : > { %v657_v19 = vpop.permute.xlu1 %656 }
 0x167   : > { %v641_v21 = vpop.permute.xlu0 %640  ;;  %v933_v17 = vsel %vm917_vm6, %v916_v25, %v657_v19 }
 0x168   : > { %v925_v40 = vsel %vm917_vm6, %v908_v45, %v641_v21 }
 0x16a   : > { %v703_v35 = vpop.permute.xlu1 %702 }
 0x16b   : > { %v687_v37 = vpop.permute.xlu0 %686  ;;  %v949_v26 = vsel %vm934_vm7, %v932_v24, %v703_v35 }
 0x16c   : > { %v941_v31 = vsel %vm934_vm7, %v924_v43, %v687_v37 }
 0x16e   : > { %v845_v55 = vpop.permute.xlu1 %844 }
 0x16f   : > { %v999_v36 = vsel %vm985_vm10, %v982_v34, %v845_v55  ;;  %v829_v52 = vpop.permute.xlu0 %828 }
 0x170   : > { %v991_v53 = vsel %vm985_vm10, %v974_v6, %v829_v52  ;;  %1491 = vmatmul.mubr.msk.f32.gmra.mxu1 %vm1014_vm11, %v999_v36 }
 0x171   : > { %1479 = vmatmul.mubr.msk.f32.gmra.mxu0 %vm1014_vm11, %v991_v53 }
 0x172   : > { %v705_v39 = vpop.permute.xlu1 %704 }
 0x173   : > { %v689_v57 = vpop.permute.xlu0 %688  ;;  %v950_v30 = vsel %vm934_vm7, %v933_v17, %v705_v39 }
 0x174   : > { %v942_v44 = vsel %vm934_vm7, %v925_v40, %v689_v57 }
 0x176   : > { %v751_v3 = vpop.permute.xlu1 %750 }
 0x177   : > { %v735_v4 = vpop.permute.xlu0 %734  ;;  %v966_v54 = vsel %vm951_vm8, %v949_v26, %v751_v3 }
 0x178   : > { %v958_v8 = vsel %vm951_vm8, %v941_v31, %v735_v4 }
 0x17a   : > { %v753_v22 = vpop.permute.xlu1 %752 }
 0x17b   : > { %v737_v12 = vpop.permute.xlu0 %736  ;;  %v967_v0 = vsel %vm951_vm8, %v950_v30, %v753_v22 }
 0x17c   : > { %v959_v33 = vsel %vm951_vm8, %v942_v44, %v737_v12 }
 0x17e   : > { %v799_v23 = vpop.permute.xlu1 %798 }
 0x17f   : > { %v783_v51 = vpop.permute.xlu0 %782  ;;  %v983_v5 = vsel %vm968_vm9, %v966_v54, %v799_v23 }
 0x180   : > { %v975_v9 = vsel %vm968_vm9, %v958_v8, %v783_v51 }
 0x182   : > { %v801_v59 = vpop.permute.xlu1 %800 }
 0x183   : > { %v785_v20 = vpop.permute.xlu0 %784  ;;  %v984_v48 = vsel %vm968_vm9, %v967_v0, %v801_v59 }
 0x184   : > { %v976_v42 = vsel %vm968_vm9, %v959_v33, %v785_v20 }
 0x186   : > { %v847_v28 = vpop.permute.xlu1 %846 }
 0x187   : > { %v1000_v29 = vsel %vm985_vm10, %v983_v5, %v847_v28  ;;  %v831_v46 = vpop.permute.xlu0 %830 }
 0x188   : > { %v992_v41 = vsel %vm985_vm10, %v975_v9, %v831_v46  ;;  %1493 = vmatprep.mubr.msk.f32.mxu1 %vm1014_vm11, %v1000_v29 }
 0x189   : > { %1481 = vmatprep.mubr.msk.f32.mxu0 %vm1014_vm11, %v992_v41 }
 0x18a   : > { %v849_v49 = vpop.permute.xlu1 %848 }
 0x18b   : > { %v1001_v47 = vsel %vm985_vm10, %v984_v48, %v849_v49  ;;  %v833_v61 = vpop.permute.xlu0 %832 }
 0x18c   : > { %v993_v62 = vsel %vm985_vm10, %v976_v42, %v833_v61  ;;  %1494 = vmatmul.mubr.msk.f32.gmra.mxu1 %vm1014_vm11, %v1001_v47 }
 0x18d   : > { %1482 = vmatmul.mubr.msk.f32.gmra.mxu0 %vm1014_vm11, %v993_v62 }
 0x1b4   : > { %v1486_v63 = vpop.f32.mrf.mxu1 }
 0x1b5   : > { %v1474_v10 = vpop.f32.mrf.mxu0  ;;  %v1179_v1 = vadd.f32 %v1486_v63, %v2335_v2 }
 0x1b6   : > { %v1139_v7 = vadd.f32 %v1474_v10, %v2335_v2  ;;  %v1173_v15 = vpop.f32.mrf.mxu1 }
 0x1b7   : > { %vm1221_vm12 = vcmp.ge.f32.partialorder %v1179_v1, 0.0  ;;  %v1237_v19 = vmul.f32 0.2, %v1179_v1  ;;  %v1133_v21 = vpop.f32.mrf.mxu0  ;;  %v1174_v35 = vadd.f32 %v2335_v2, %v1173_v15 }
 0x1b8   : > { %vm1213_vm13 = vcmp.ge.f32.partialorder %v1139_v7, 0.0  ;;  %v1229_v37 = vmul.f32 0.2, %v1139_v7  ;;  %v1134_v11 = vadd.f32 %v2335_v2, %v1133_v21 }
 0x1b9   : > { %v1253_v16 = vsel %vm1221_vm12, %v1179_v1, %v1237_v19  ;;  %vm1220_vm14 = vcmp.ge.f32.partialorder %v1174_v35, 0.0  ;;  %v1236_v38 = vmul.f32 0.2, %v1174_v35 }
 0x1ba   : > { %v1245_v50 = vsel %vm1213_vm13, %v1139_v7, %v1229_v37  ;;  %1269 = vst.msk [vmem:[%s2342_s27 + $0x48] sm:$0xff] %vm917_vm6, %v1253_v16  ;;  %vm1212_vm15 = vcmp.ge.f32.partialorder %v1134_v11, 0.0  ;;  %v1228_v34 = vmul.f32 0.2, %v1134_v11 }
 0x1bb   : > { %1261 = vst.msk [vmem:[%s2342_s27 + $0x8] sm:$0xff] %vm917_vm6, %v1245_v50  ;;  %v1252_v55 = vsel %vm1220_vm14, %v1174_v35, %v1236_v38 }
 0x1bc   : > { %v1244_v6 = vsel %vm1212_vm15, %v1134_v11, %v1228_v34  ;;  %1268 = vst.msk [vmem:[%s2342_s27 + $0x40] sm:$0xff] %vm917_vm6, %v1252_v55 }
 0x1bd   : > { %1260 = vst.msk [vmem:[%s2342_s27] sm:$0xff] %vm917_vm6, %v1244_v6 }
 0x1f4   : > { %v1477_v36 = vpop.f32.mrf.mxu0  ;;  %v1489_v52 = vpop.f32.mrf.mxu1 }
 0x1f5   : > { %v1149_v53 = vadd.f32 %v1477_v36, %v2335_v2  ;;  %v1189_v39 = vadd.f32 %v1489_v52, %v2335_v2 }
 0x1f6   : > { %v1143_v57 = vpop.f32.mrf.mxu0  ;;  %v1183_v3 = vpop.f32.mrf.mxu1 }
 0x1f7   : > { %vm1215_vm0 = vcmp.ge.f32.partialorder %v1149_v53, 0.0  ;;  %v1231_v4 = vmul.f32 0.2, %v1149_v53  ;;  %vm1223_vm1 = vcmp.ge.f32.partialorder %v1189_v39, 0.0  ;;  %v1239_v22 = vmul.f32 0.2, %v1189_v39 }
 0x1f8   : > { %v1144_v12 = vadd.f32 %v2335_v2, %v1143_v57  ;;  %v1184_v23 = vadd.f32 %v2335_v2, %v1183_v3 }
 0x1f9   : > { %v1247_v51 = vsel %vm1215_vm0, %v1149_v53, %v1231_v4  ;;  %v1255_v56 = vsel %vm1223_vm1, %v1189_v39, %v1239_v22 }
 0x1fa   : > { %1263 = vst.msk [vmem:[%s2342_s27 + $0x18] sm:$0xff] %vm917_vm6, %v1247_v51  ;;  %1271 = vst.msk [vmem:[%s2342_s27 + $0x58] sm:$0xff] %vm917_vm6, %v1255_v56  ;;  %vm1214_vm2 = vcmp.ge.f32.partialorder %v1144_v12, 0.0  ;;  %v1230_v59 = vmul.f32 0.2, %v1144_v12  ;;  %vm1222_vm3 = vcmp.ge.f32.partialorder %v1184_v23, 0.0 }
 0x1fb   : > { %v1238_v60 = vmul.f32 0.2, %v1184_v23 }
 0x1fc   : > { %v1246_v24 = vsel %vm1214_vm2, %v1144_v12, %v1230_v59 }
 0x1fd   : > { %v1254_v20 = vsel %vm1222_vm3, %v1184_v23, %v1238_v60  ;;  %1262 = vst.msk [vmem:[%s2342_s27 + $0x10] sm:$0xff] %vm917_vm6, %v1246_v24 }
 0x1fe   : > { %1270 = vst.msk [vmem:[%s2342_s27 + $0x50] sm:$0xff] %vm917_vm6, %v1254_v20 }
 0x230   : > { %v1492_v58 = vpop.f32.mrf.mxu1 }
 0x231   : > { %v1480_v18 = vpop.f32.mrf.mxu0  ;;  %v1199_v43 = vadd.f32 %v1492_v58, %v2335_v2 }
 0x232   : > { %v1159_v26 = vadd.f32 %v1480_v18, %v2335_v2  ;;  %v1193_v13 = vpop.f32.mrf.mxu1 }
 0x233   : > { %vm1225_vm4 = vcmp.ge.f32.partialorder %v1199_v43, 0.0  ;;  %v1241_v14 = vmul.f32 0.2, %v1199_v43  ;;  %v1153_v27 = vpop.f32.mrf.mxu0  ;;  %v1194_v31 = vadd.f32 %v2335_v2, %v1193_v13 }
 0x234   : > { %vm1217_vm5 = vcmp.ge.f32.partialorder %v1159_v26, 0.0  ;;  %v1233_v54 = vmul.f32 0.2, %v1159_v26  ;;  %v1154_v32 = vadd.f32 %v2335_v2, %v1153_v27 }
 0x235   : > { %v1257_v25 = vsel %vm1225_vm4, %v1199_v43, %v1241_v14  ;;  %vm1224_vm7 = vcmp.ge.f32.partialorder %v1194_v31, 0.0  ;;  %v1240_v8 = vmul.f32 0.2, %v1194_v31 }
 0x236   : > { %v1249_v5 = vsel %vm1217_vm5, %v1159_v26, %v1233_v54  ;;  %1273 = vst.msk [vmem:[%s2342_s27 + $0x68] sm:$0xff] %vm917_vm6, %v1257_v25  ;;  %vm1216_vm8 = vcmp.ge.f32.partialorder %v1154_v32, 0.0  ;;  %v1232_v28 = vmul.f32 0.2, %v1154_v32 }
 0x237   : > { %1265 = vst.msk [vmem:[%s2342_s27 + $0x28] sm:$0xff] %vm917_vm6, %v1249_v5  ;;  %v1256_v45 = vsel %vm1224_vm7, %v1194_v31, %v1240_v8 }
 0x238   : > { %v1248_v17 = vsel %vm1216_vm8, %v1154_v32, %v1232_v28  ;;  %1272 = vst.msk [vmem:[%s2342_s27 + $0x60] sm:$0xff] %vm917_vm6, %v1256_v45 }
 0x239   : > { %1264 = vst.msk [vmem:[%s2342_s27 + $0x20] sm:$0xff] %vm917_vm6, %v1248_v17 }
 0x24c   : > { %v1495_v9 = vpop.f32.mrf.mxu1 }
 0x24d   : > { %v1483_v29 = vpop.f32.mrf.mxu0  ;;  %v1209_v46 = vadd.f32 %v1495_v9, %v2335_v2 }
 0x24e   : > { %v1169_v40 = vadd.f32 %v1483_v29, %v2335_v2  ;;  %v1203_v30 = vpop.f32.mrf.mxu1 }
 0x24f   : > { %vm1227_vm9 = vcmp.ge.f32.partialorder %v1209_v46, 0.0  ;;  %v1243_v41 = vmul.f32 0.2, %v1209_v46  ;;  %v1163_v44 = vpop.f32.mrf.mxu0  ;;  %v1204_v0 = vadd.f32 %v2335_v2, %v1203_v30 }
 0x250   : > { %vm1219_vm10 = vcmp.ge.f32.partialorder %v1169_v40, 0.0  ;;  %v1235_v33 = vmul.f32 0.2, %v1169_v40  ;;  %v1164_v48 = vadd.f32 %v2335_v2, %v1163_v44 }
 0x251   : > { %v1259_v49 = vsel %vm1227_vm9, %v1209_v46, %v1243_v41  ;;  %vm1226_vm11 = vcmp.ge.f32.partialorder %v1204_v0, 0.0  ;;  %v1242_v42 = vmul.f32 0.2, %v1204_v0 }
 0x252   : > { %v1251_v47 = vsel %vm1219_vm10, %v1169_v40, %v1235_v33  ;;  %1275 = vst.msk [vmem:[%s2342_s27 + $0x78] sm:$0xff] %vm917_vm6, %v1259_v49  ;;  %vm1218_vm12 = vcmp.ge.f32.partialorder %v1164_v48, 0.0  ;;  %v1234_v61 = vmul.f32 0.2, %v1164_v48 }
 0x253   : > { %1267 = vst.msk [vmem:[%s2342_s27 + $0x38] sm:$0xff] %vm917_vm6, %v1251_v47  ;;  %v1258_v62 = vsel %vm1226_vm11, %v1204_v0, %v1242_v42 }
 0x254   : > { %v1250_v63 = vsel %vm1218_vm12, %v1164_v48, %v1234_v61  ;;  %1274 = vst.msk [vmem:[%s2342_s27 + $0x70] sm:$0xff] %vm917_vm6, %v1258_v62 }
 0x255   : > { %1266 = vst.msk [vmem:[%s2342_s27 + $0x30] sm:$0xff] %vm917_vm6, %v1250_v63 }
 0x256 PF: > { %s14_s19 = sadd.s32 1, %s1595_s19   ;;  %s2437_s15 = smov %s1587_s17 }
 0x257   : > { %p11_p9 = scmp.ge.s32.totalorder %s14_s19, 6   ;;  %s2438_s16 = smov %s1591_s18 }
 0x258   : > { %s2439_s17 = smov %s2442_s20  ;;  %s2440_s18 = smov %s2446_s21 }
 0x259   :  { %13 = sbr.rel (!%p11_p9) target bundleno = 3 (0x3), region = 69 }

</bundles_post_ra>
